<compile_context>
chip_gen: v5e
topology: v5e:2x2
jax: 0.10.0
libtpu: 0.0.40
codegen_flags: <defaults>
</compile_context>

<pallas_src>
import functools

import jax
import jax.numpy as jnp
from jax.experimental import pallas as pl
from jax.experimental.pallas import tpu as pltpu


def _device_kind() -> str:
    try:
        return jax.devices()[0].device_kind.lower()
    except Exception:
        return ""


def _gate_delta_kernel(x_ref, cx_ref, dyn_ref, *rest, n_rows, rt, bt, nblk, npr,
                       tau, thr, split, native_math, ragged):
    """Grid = (n_split, B // bt, npr); the reduction axis (npr) is innermost.

    Streams (bt, rt, 128) feature blocks, accumulating lane-parallel L1
    partial sums in f32 scratch.  In the non-split path the finalize step
    applies the linear threshold and the hard gumbel-sigmoid gate; in the
    split path it writes per-(split, batch) partial lane sums instead.
    """
    if split:
        pd_ref, px_ref, acc_d_ref, acc_x_ref = rest
    else:
        gate_ref, acc_d_ref, acc_x_ref = rest

    s = pl.program_id(0)
    r = pl.program_id(2)
    lb = s * npr + r                      # logical reduction-block index

    @pl.when(r == 0)
    def _init():
        acc_d_ref[...] = jnp.zeros_like(acc_d_ref)
        acc_x_ref[...] = jnp.zeros_like(acc_x_ref)

    def _accumulate(masked):
        if bt == 1:
            xb = x_ref[0]                 # (rt, 128), native dtype
            cb = cx_ref[0]
        else:
            xb = x_ref[...]               # (bt, rt, 128)
            cb = cx_ref[...]
        if not native_math:
            xb = xb.astype(jnp.float32)   # v5e: no bf16 VALU -> upcast up front
            cb = cb.astype(jnp.float32)
        ad = jnp.abs(xb - cb)             # bf16-native on v6e/v7x
        ax = jnp.abs(xb)
        if masked:
            # Only reached with bt == 1.  Covers the ragged last block and any
            # fully out-of-range duplicate block (clamped index map): all of
            # its logical rows are >= n_rows, so it contributes zero.
            rows = lb * rt + jax.lax.broadcasted_iota(jnp.int32, (rt, 128), 0)
            valid = rows < n_rows
            ad = jnp.where(valid, ad, 0.0)
            ax = jnp.where(valid, ax, 0.0)
        ad = ad.astype(jnp.float32)       # upcast only at the accumulation adds
        ax = ax.astype(jnp.float32)
        if bt == 1 and rt % 8 == 0:
            # Pure element-wise (VPU) accumulation into an (8, 128) slab.
            acc_d_ref[...] += jnp.sum(ad.reshape(rt // 8, 8, 128),
                                      axis=0).reshape(1, 8, 128)
            acc_x_ref[...] += jnp.sum(ax.reshape(rt // 8, 8, 128),
                                      axis=0).reshape(1, 8, 128)
        elif bt == 1:
            acc_d_ref[...] += jnp.sum(ad, axis=0, keepdims=True).reshape(1, 1, 128)
            acc_x_ref[...] += jnp.sum(ax, axis=0, keepdims=True).reshape(1, 1, 128)
        else:
            acc_d_ref[...] += jnp.sum(ad, axis=1, keepdims=True)   # (bt, 1, 128)
            acc_x_ref[...] += jnp.sum(ax, axis=1, keepdims=True)

    if ragged:
        # Pay the masking cost only on the last real block (and on clamped
        # out-of-range duplicates in the uneven-split case).
        @pl.when(lb < nblk - 1)
        def _body():
            _accumulate(False)

        @pl.when(lb >= nblk - 1)
        def _tail():
            _accumulate(True)
    else:
        _accumulate(False)

    @pl.when(r == pl.num_programs(2) - 1)
    def _finalize():
        d_lane = jnp.sum(acc_d_ref[...], axis=1, keepdims=True)    # (bt, 1, 128)
        x_lane = jnp.sum(acc_x_ref[...], axis=1, keepdims=True)
        if split:
            pd_ref[0] = d_lane
            px_ref[0] = x_lane
        else:
            d_sum = jnp.sum(d_lane, axis=2, keepdims=True)         # (bt, 1, 1)
            x_sum = jnp.sum(x_lane, axis=2, keepdims=True)
            # NOTE: matches torch — sum|x| == 0 gives a NaN/Inf-driven gate.
            error = d_sum / x_sum
            dyn = dyn_ref[...].astype(jnp.float32)                 # (bt, 1, 1)
            y_soft = jax.nn.sigmoid((error - dyn) / tau)
            gate = (y_soft > thr).astype(gate_ref.dtype)
            gate_ref[...] = jnp.broadcast_to(gate, gate_ref.shape)


def gate_delta_forward(x, cache_x, cond, weight, bias, *, tau=1.0, thr=0.5,
                       block_bytes=None, num_splits=None):
    """Pallas implementation of gate_DELTA.forward (noise=False path).

    x, cache_x : (B, ...)  arbitrary trailing dims, flattened per batch
    cond       : (B, H)
    weight     : (1, H)    nn.Linear(H, 1) weight (row-major)
    bias       : (1,)      nn.Linear bias
    returns    : (B,)      hard gate in {0.0, 1.0} (float32)
    """
    B = x.shape[0]
    xf = x.reshape(B, -1)          # free view, native dtype — no f32 copy
    cf = cache_x.reshape(B, -1)
    F = xf.shape[1]

    # dyn_thr: tiny (B,H)x(H,1) matvec done in XLA; removes three
    # double-buffered VMEM windows and the in-kernel cross-lane reduce.
    dyn_thr = (cond.astype(jnp.float32)
               @ weight.astype(jnp.float32).reshape(-1, 1))[:, 0]
    dyn_thr = dyn_thr + bias.astype(jnp.float32)[0]                # (B,)

    if F % 128 != 0:
        # TODO(synk): replace with in-kernel lane-tail masking to avoid this
        # HBM copy; DiT token features (tokens * hidden) are 128-aligned.
        pad = (-F) % 128
        xf = jnp.pad(xf, ((0, 0), (0, pad)))
        cf = jnp.pad(cf, ((0, 0), (0, pad)))
    R = xf.shape[1] // 128
    x3 = xf.reshape(B, R, 128)     # free when F % 128 == 0 (row-major)
    c3 = cf.reshape(B, R, 128)
    dtype = x3.dtype
    itemsize = jnp.dtype(dtype).itemsize

    kind = _device_kind()
    is_v5e = ("v5 lite" in kind) or ("v5e" in kind)
    two_tc = any(t in kind for t in ("v4", "v5p", "v7"))   # 2-TC / megacore

    if block_bytes is None:
        # ~4 MiB per streamed block on v6e (128 MiB VMEM); 2 MiB on v5e and on
        # v7x (64 MiB VMEM) to leave headroom for elementwise temporaries.
        block_bytes = (4 << 20) if "v6" in kind else (2 << 20)

    # bf16 sub/abs stay packed where the VPU is bf16-native (v6e/v7x).
    native_math = (dtype == jnp.float32) or (dtype == jnp.bfloat16 and not is_v5e)

    # Rows (groups of 128 lanes) per reduction block: multiple of 8.
    rt_target = max(8, (block_bytes // (128 * itemsize)) // 8 * 8)
    if R <= rt_target:
        rt, nblk, bt = R, 1, 1
        # Small feature dim: pack several batches per grid step to amortize
        # the ~0.35 us per-step overhead (bt must divide B).
        for cand in range(min(8, B), 1, -1):
            if B % cand == 0 and cand * R <= rt_target:
                bt = cand
                break
    else:
        rt, nblk, bt = rt_target, pl.cdiv(R, rt_target), 1

    # Split the feature reduction across the two TensorCores when the batch
    # axis alone cannot keep both busy (B == 1 on v7x-class chips).  On 1-TC
    # chips a leading size-2 "parallel" axis is just a cheap serial loop.
    if num_splits is None:
        num_splits = 2 if (two_tc and B == 1 and nblk >= 8) else 1
    n_split = max(1, min(int(num_splits), nblk))
    npr = pl.cdiv(nblk, n_split)
    split = n_split > 1
    ragged = (nblk * rt != R) or (n_split * npr != nblk)

    acc_rows = 8 if (bt == 1 and rt % 8 == 0) else 1
    dyn3 = dyn_thr.reshape(B, 1, 1)

    if split:
        def xc_map(s, g, r):
            # Clamp so the DMA never indexes past the last real block; the
            # kernel masks the duplicate block's contribution to zero.
            return (g, jnp.minimum(s * npr + r, nblk - 1), 0)
    else:
        def xc_map(s, g, r):
            return (g, r, 0)

    # NOTE: if profiling on v7x shows exposed DMA at step boundaries, try
    # pipeline_mode=pl.Buffered(3) on the two streamed specs below.
    in_specs = [
        pl.BlockSpec((bt, rt, 128), xc_map),                       # x
        pl.BlockSpec((bt, rt, 128), xc_map),                       # cache_x
        pl.BlockSpec((bt, 1, 1), lambda s, g, r: (g, 0, 0)),       # dyn_thr
    ]
    if split:
        out_shape = (jax.ShapeDtypeStruct((n_split, B, 1, 128), jnp.float32),
                     jax.ShapeDtypeStruct((n_split, B, 1, 128), jnp.float32))
        out_specs = (pl.BlockSpec((1, bt, 1, 128), lambda s, g, r: (s, g, 0, 0)),
                     pl.BlockSpec((1, bt, 1, 128), lambda s, g, r: (s, g, 0, 0)))
    else:
        out_shape = jax.ShapeDtypeStruct((B, 1, 128), jnp.float32)
        out_specs = pl.BlockSpec((bt, 1, 128), lambda s, g, r: (g, 0, 0))

    kernel = functools.partial(
        _gate_delta_kernel, n_rows=R, rt=rt, bt=bt, nblk=nblk, npr=npr,
        tau=float(tau), thr=float(thr), split=split, native_math=native_math,
        ragged=ragged)

    blk_bytes = bt * rt * 128 * itemsize
    vmem_cap = (48 << 20) if "v7" in kind else (112 << 20)
    compiler_params = pltpu.CompilerParams(
        dimension_semantics=("parallel", "parallel", "arbitrary"),
        vmem_limit_bytes=int(min(vmem_cap, 20 * blk_bytes + (16 << 20))))

    cost = pl.CostEstimate(
        flops=int(5 * B * R * 128),
        transcendentals=int(0 if split else B),
        bytes_accessed=int(2 * B * R * 128 * itemsize + B * 1024))

    out = pl.pallas_call(
        kernel,
        out_shape=out_shape,
        grid_spec=pltpu.PrefetchScalarGridSpec(
            num_scalar_prefetch=0,
            grid=(n_split, B // bt, npr),
            in_specs=in_specs,
            out_specs=out_specs,
            scratch_shapes=[pltpu.VMEM((bt, acc_rows, 128), jnp.float32),
                            pltpu.VMEM((bt, acc_rows, 128), jnp.float32)]),
        compiler_params=compiler_params,
        cost_estimate=cost,
    )(x3, c3, dyn3)

    if split:
        pd, px = out
        d_sum = jnp.sum(pd, axis=(0, 2, 3))        # combine the per-core partials
        x_sum = jnp.sum(px, axis=(0, 2, 3))
        error = d_sum / x_sum                      # NaN/Inf if sum|x|==0 (matches torch)
        y_soft = jax.nn.sigmoid((error - dyn_thr) / tau)
        return (y_soft > thr).astype(jnp.float32)
    return out[:, 0, 0]


def _reference(x, cache_x, cond, weight, bias, tau=1.0, thr=0.5):
    B = x.shape[0]
    xf = x.reshape(B, -1).astype(jnp.float32)
    cf = cache_x.reshape(B, -1).astype(jnp.float32)
    error = jnp.sum(jnp.abs(xf - cf), axis=1) / jnp.sum(jnp.abs(xf), axis=1)
    dyn_thr = (cond.astype(jnp.float32)
               @ weight.astype(jnp.float32).reshape(-1, 1))[:, 0]
    dyn_thr = dyn_thr + bias.astype(jnp.float32)[0]
    y_soft = jax.nn.sigmoid((error - dyn_thr) / tau)
    return (y_soft > thr).astype(jnp.float32)


if __name__ == "__main__":
    tau, thr = 1.0, 0.5
    keys = jax.random.split(jax.random.PRNGKey(0), 10)

    # 1) f32, small feature dim (whole reduction in one block, bt>1 batch pack).
    B, N, hidden = 2, 8, 32
    x = jax.random.normal(keys[0], (B, N, hidden), dtype=jnp.float32)
    cache_x = x + 0.1 * jax.random.normal(keys[1], (B, N, hidden), dtype=jnp.float32)
    cond = jax.random.normal(keys[2], (B, hidden), dtype=jnp.float32)
    bound = 1.0 / (hidden ** 0.5)
    weight = jax.random.uniform(keys[3], (1, hidden), minval=-bound, maxval=bound,
                                dtype=jnp.float32)
    bias = jax.random.uniform(keys[4], (1,), minval=-bound, maxval=bound,
                              dtype=jnp.float32)

    gate = jax.block_until_ready(
        gate_delta_forward(x, cache_x, cond, weight, bias, tau=tau, thr=thr))
    ref = _reference(x, cache_x, cond, weight, bias, tau=tau, thr=thr)
    assert gate.shape == (B,)
    assert jnp.allclose(gate, ref), (gate, ref)

    # 2) bf16, B=1, multi-block reduction with ragged tail, forced 2-way
    #    TensorCore split (partial-sum output path + wrapper combine).
    N2 = 33
    x2 = jax.random.normal(keys[5], (1, N2, 128), dtype=jnp.float32).astype(jnp.bfloat16)
    cache_x2 = (x2.astype(jnp.float32)
                + 0.05 * jax.random.normal(keys[6], (1, N2, 128), dtype=jnp.float32)
                ).astype(jnp.bfloat16)
    cond2 = jax.random.normal(keys[7], (1, hidden), dtype=jnp.float32)
    gate2 = jax.block_until_ready(
        gate_delta_forward(x2, cache_x2, cond2, weight, bias, tau=tau, thr=thr,
                           block_bytes=8192, num_splits=2))
    ref2 = _reference(x2, cache_x2, cond2, weight, bias, tau=tau, thr=thr)
    assert gate2.shape == (1,)
    assert jnp.allclose(gate2, ref2), (gate2, ref2)

    # 3) f32, multi-step reduction with ragged tail, gate computed in-kernel.
    x3_ = jax.random.normal(keys[8], (B, N2, 128), dtype=jnp.float32)
    cache_x3 = x3_ + 0.02 * jax.random.normal(keys[9], (B, N2, 128), dtype=jnp.float32)
    gate3 = jax.block_until_ready(
        gate_delta_forward(x3_, cache_x3, cond, weight, bias, tau=tau, thr=thr,
                           block_bytes=8192))
    ref3 = _reference(x3_, cache_x3, cond, weight, bias, tau=tau, thr=thr)
    assert gate3.shape == (B,)
    assert jnp.allclose(gate3, ref3), (gate3, ref3)

    print("KERNEL_OK")
</pallas_src>

<mosaic_0001>
module attributes {stable_mosaic.version = 11 : i64} {
  func.func @_gate_delta_kernel(%arg0: i32, %arg1: i32, %arg2: i32, %arg3: memref<2x2x128xf32, #tpu.memory_space<vmem>>, %arg4: memref<2x2x128xf32, #tpu.memory_space<vmem>>, %arg5: memref<2x1x1xf32, #tpu.memory_space<vmem>>, %arg6: memref<2x1x128xf32, #tpu.memory_space<vmem>>, %arg7: memref<2x1x128xf32, #tpu.memory_space<vmem>>, %arg8: memref<2x1x128xf32, #tpu.memory_space<vmem>>) attributes {dimension_semantics = [#tpu.dimension_semantics<parallel>, #tpu.dimension_semantics<parallel>, #tpu.dimension_semantics<arbitrary>], iteration_bounds = array<i64: 1, 1, 1>, scalar_prefetch = 0 : i64, scratch_operands = 2 : i64, tpu.core_type = #tpu.core_type<tc>, window_params = [{transform_indices = @transform_0, window_bounds = array<i64: 2, 2, 128>}, {transform_indices = @transform_1, window_bounds = array<i64: 2, 2, 128>}, {transform_indices = @transform_2, window_bounds = array<i64: 2, 1, 1>}, {transform_indices = @transform_3, window_bounds = array<i64: 2, 1, 128>}]} {
    %c0_i32 = arith.constant 0 : i32
    %0 = arith.cmpi eq, %arg2, %c0_i32 : i32
    %1 = arith.extui %0 : i1 to i32
    %c0_i32_0 = arith.constant 0 : i32
    %2 = arith.cmpi ne, %1, %c0_i32_0 : i32
    scf.if %2 {
      %cst_21 = arith.constant 0.000000e+00 : f32
      %21 = vector.broadcast %cst_21 : f32 to vector<2x1x128xf32>
      %c0_22 = arith.constant 0 : index
      %c0_23 = arith.constant 0 : index
      %c0_24 = arith.constant 0 : index
      %22 = vector.load %arg7[%c0_22, %c0_23, %c0_24] : memref<2x1x128xf32, #tpu.memory_space<vmem>>, vector<2x1x128xf32>
      tpu.vector_store %arg7[%c0_22, %c0_23, %c0_24], %21 {strides = array<i32>} : memref<2x1x128xf32, #tpu.memory_space<vmem>>, vector<2x1x128xf32>,
      %cst_25 = arith.constant 0.000000e+00 : f32
      %23 = vector.broadcast %cst_25 : f32 to vector<2x1x128xf32>
      %c0_26 = arith.constant 0 : index
      %c0_27 = arith.constant 0 : index
      %c0_28 = arith.constant 0 : index
      %24 = vector.load %arg8[%c0_26, %c0_27, %c0_28] : memref<2x1x128xf32, #tpu.memory_space<vmem>>, vector<2x1x128xf32>
      tpu.vector_store %arg8[%c0_26, %c0_27, %c0_28], %23 {strides = array<i32>} : memref<2x1x128xf32, #tpu.memory_space<vmem>>, vector<2x1x128xf32>,
    } else {
    }
    %c0 = arith.constant 0 : index
    %c0_1 = arith.constant 0 : index
    %c0_2 = arith.constant 0 : index
    %3 = vector.load %arg3[%c0, %c0_1, %c0_2] : memref<2x2x128xf32, #tpu.memory_space<vmem>>, vector<2x2x128xf32>
    %c0_3 = arith.constant 0 : index
    %c0_4 = arith.constant 0 : index
    %c0_5 = arith.constant 0 : index
    %4 = vector.load %arg4[%c0_3, %c0_4, %c0_5] : memref<2x2x128xf32, #tpu.memory_space<vmem>>, vector<2x2x128xf32>
    %5 = arith.subf %3, %4 : vector<2x2x128xf32>
    %6 = math.absf %5 : vector<2x2x128xf32>
    %7 = math.absf %3 : vector<2x2x128xf32>
    %c0_6 = arith.constant 0 : index
    %c0_7 = arith.constant 0 : index
    %c0_8 = arith.constant 0 : index
    %8 = vector.load %arg7[%c0_6, %c0_7, %c0_8] : memref<2x1x128xf32, #tpu.memory_space<vmem>>, vector<2x1x128xf32>
    %cst = arith.constant dense<0.000000e+00> : vector<2x128xf32>
    %9 = vector.multi_reduction <add>, %6, %cst [1] : vector<2x2x128xf32> to vector<2x128xf32>
    %10 = vector.shape_cast %9 : vector<2x128xf32> to vector<2x1x128xf32>
    %11 = arith.addf %8, %10 : vector<2x1x128xf32>
    %c0_9 = arith.constant 0 : index
    %c0_10 = arith.constant 0 : index
    %c0_11 = arith.constant 0 : index
    %12 = vector.load %arg7[%c0_9, %c0_10, %c0_11] : memref<2x1x128xf32, #tpu.memory_space<vmem>>, vector<2x1x128xf32>
    tpu.vector_store %arg7[%c0_9, %c0_10, %c0_11], %11 {strides = array<i32>} : memref<2x1x128xf32, #tpu.memory_space<vmem>>, vector<2x1x128xf32>,
    %c0_12 = arith.constant 0 : index
    %c0_13 = arith.constant 0 : index
    %c0_14 = arith.constant 0 : index
    %13 = vector.load %arg8[%c0_12, %c0_13, %c0_14] : memref<2x1x128xf32, #tpu.memory_space<vmem>>, vector<2x1x128xf32>
    %cst_15 = arith.constant dense<0.000000e+00> : vector<2x128xf32>
    %14 = vector.multi_reduction <add>, %7, %cst_15 [1] : vector<2x2x128xf32> to vector<2x128xf32>
    %15 = vector.shape_cast %14 : vector<2x128xf32> to vector<2x1x128xf32>
    %16 = arith.addf %13, %15 : vector<2x1x128xf32>
    %c0_16 = arith.constant 0 : index
    %c0_17 = arith.constant 0 : index
    %c0_18 = arith.constant 0 : index
    %17 = vector.load %arg8[%c0_16, %c0_17, %c0_18] : memref<2x1x128xf32, #tpu.memory_space<vmem>>, vector<2x1x128xf32>
    tpu.vector_store %arg8[%c0_16, %c0_17, %c0_18], %16 {strides = array<i32>} : memref<2x1x128xf32, #tpu.memory_space<vmem>>, vector<2x1x128xf32>,
    %c0_i32_19 = arith.constant 0 : i32
    %18 = arith.cmpi eq, %arg2, %c0_i32_19 : i32
    %19 = arith.extui %18 : i1 to i32
    %c0_i32_20 = arith.constant 0 : i32
    %20 = arith.cmpi ne, %19, %c0_i32_20 : i32
    scf.if %20 {
      %c0_21 = arith.constant 0 : index
      %c0_22 = arith.constant 0 : index
      %c0_23 = arith.constant 0 : index
      %21 = vector.load %arg7[%c0_21, %c0_22, %c0_23] : memref<2x1x128xf32, #tpu.memory_space<vmem>>, vector<2x1x128xf32>
      %cst_24 = arith.constant dense<0.000000e+00> : vector<2x128xf32>
      %22 = vector.multi_reduction <add>, %21, %cst_24 [1] : vector<2x1x128xf32> to vector<2x128xf32>
      %23 = vector.shape_cast %22 : vector<2x128xf32> to vector<2x1x128xf32>
      %c0_25 = arith.constant 0 : index
      %c0_26 = arith.constant 0 : index
      %c0_27 = arith.constant 0 : index
      %24 = vector.load %arg8[%c0_25, %c0_26, %c0_27] : memref<2x1x128xf32, #tpu.memory_space<vmem>>, vector<2x1x128xf32>
      %cst_28 = arith.constant dense<0.000000e+00> : vector<2x128xf32>
      %25 = vector.multi_reduction <add>, %24, %cst_28 [1] : vector<2x1x128xf32> to vector<2x128xf32>
      %26 = vector.shape_cast %25 : vector<2x128xf32> to vector<2x1x128xf32>
      %cst_29 = arith.constant dense<0.000000e+00> : vector<2x1xf32>
      %27 = vector.multi_reduction <add>, %23, %cst_29 [2] : vector<2x1x128xf32> to vector<2x1xf32>
      %28 = vector.shape_cast %27 : vector<2x1xf32> to vector<2x1x1xf32>
      %cst_30 = arith.constant dense<0.000000e+00> : vector<2x1xf32>
      %29 = vector.multi_reduction <add>, %26, %cst_30 [2] : vector<2x1x128xf32> to vector<2x1xf32>
      %30 = vector.shape_cast %29 : vector<2x1xf32> to vector<2x1x1xf32>
      %31 = arith.divf %28, %30 : vector<2x1x1xf32>
      %c0_31 = arith.constant 0 : index
      %c0_32 = arith.constant 0 : index
      %c0_33 = arith.constant 0 : index
      %32 = vector.load %arg5[%c0_31, %c0_32, %c0_33] : memref<2x1x1xf32, #tpu.memory_space<vmem>>, vector<2x1x1xf32>
      %33 = arith.subf %31, %32 : vector<2x1x1xf32>
      %cst_34 = arith.constant 1.000000e+00 : f32
      %34 = vector.broadcast %cst_34 : f32 to vector<2x1x1xf32>
      %35 = arith.divf %33, %34 : vector<2x1x1xf32>
      %36 = arith.negf %35 : vector<2x1x1xf32>
      %37 = math.exp %36 : vector<2x1x1xf32>
      %cst_35 = arith.constant 1.000000e+00 : f32
      %38 = vector.broadcast %cst_35 : f32 to vector<2x1x1xf32>
      %39 = arith.addf %38, %37 : vector<2x1x1xf32>
      %40 = arith.divf %38, %39 : vector<2x1x1xf32>
      %cst_36 = arith.constant 5.000000e-01 : f32
      %41 = vector.broadcast %cst_36 : f32 to vector<2x1x1xf32>
      %42 = arith.cmpf ogt, %40, %41 : vector<2x1x1xf32>
      %43 = arith.extui %42 : vector<2x1x1xi1> to vector<2x1x1xi32>
      %44 = arith.sitofp %43 : vector<2x1x1xi32> to vector<2x1x1xf32>
      %45 = vector.shape_cast %44 : vector<2x1x1xf32> to vector<2x1x1xf32>
      %46 = vector.broadcast %45 : vector<2x1x1xf32> to vector<2x1x128xf32>
      %c0_37 = arith.constant 0 : index
      %c0_38 = arith.constant 0 : index
      %c0_39 = arith.constant 0 : index
      %47 = vector.load %arg6[%c0_37, %c0_38, %c0_39] : memref<2x1x128xf32, #tpu.memory_space<vmem>>, vector<2x1x128xf32>
      tpu.vector_store %arg6[%c0_37, %c0_38, %c0_39], %46 {strides = array<i32>} : memref<2x1x128xf32, #tpu.memory_space<vmem>>, vector<2x1x128xf32>,
    } else {
    }
    return
  }
  func.func @transform_0(%arg0: i32, %arg1: i32, %arg2: i32) -> (i32, i32, i32) {
    %c0_i32 = arith.constant 0 : i32
    %c0_i32_0 = arith.constant 0 : i32
    return %arg1, %arg2, %c0_i32 : i32, i32, i32
  }
  func.func @transform_1(%arg0: i32, %arg1: i32, %arg2: i32) -> (i32, i32, i32) {
    %c0_i32 = arith.constant 0 : i32
    %c0_i32_0 = arith.constant 0 : i32
    return %arg1, %arg2, %c0_i32 : i32, i32, i32
  }
  func.func @transform_2(%arg0: i32, %arg1: i32, %arg2: i32) -> (i32, i32, i32) {
    %c0_i32 = arith.constant 0 : i32
    %c0_i32_0 = arith.constant 0 : i32
    %c0_i32_1 = arith.constant 0 : i32
    return %arg1, %c0_i32, %c0_i32_0 : i32, i32, i32
  }
  func.func @transform_3(%arg0: i32, %arg1: i32, %arg2: i32) -> (i32, i32, i32) {
    %c0_i32 = arith.constant 0 : i32
    %c0_i32_0 = arith.constant 0 : i32
    %c0_i32_1 = arith.constant 0 : i32
    return %arg1, %c0_i32, %c0_i32_0 : i32, i32, i32
  }
}

</mosaic_0001>

<bundles_post_ra>
// kernel: tpu_custom_call.1
= control target key start
LH: loop header
LB: loop body
LE: loop exit
PB: predicated region body
PF: predicated region fallthrough
CT: control target
= control target key end

     0   :  { %8 = vsyncpa [#allocation5], 0  ;;  %s404_s0 = inlined_call_operand.hbm [shape: f32[2,2,128], index: 0, kind: input, shape index: {}]   ;;  %s405_s1 = inlined_call_operand.hbm [shape: f32[2,2,128], index: 1, kind: input, shape index: {}]   ;;  %s406_s2 = inlined_call_operand.vmem [shape: f32[2,1,1], index: 2, kind: input, shape index: {}]   ;;  %s407_s3 = inlined_call_operand.hbm [shape: f32[2,1,128], index: 3, kind: output, shape index: {}]  }
   0x1   :  { %9 = vsyncpa [#allocation8], 0 }
   0x2   :  { %10 = vsyncpa [#allocation6], 0  ;;  %s15_s14 = sshll.u32 %s404_s0, 4  ;;  %s350_s15 = smov [#allocation4]   ;;  %s16_s14 = int_to_ptr.hbm [resolvable:$true] %s15_s14 }
   0x3   :  { %s17_s16 = sshll.u32 %s350_s15, 4  ;;  %s28_s19 = sshll.u32 %s405_s1, 4  ;;  %s18_s16 = int_to_ptr.vmem [resolvable:$true] %s17_s16  ;;  %s29_s19 = int_to_ptr.hbm [resolvable:$true] %s28_s19 }
   0x4   :  { %s351_s20 = smov 32   ;;  %s352_s21 = smov 2  }
   0x5   :  { %23 = dma.hbm_to_vmem [thread:$0]  %s16_s14, 64, %s18_s16, [#allocation5], %s351_s20, %s351_s20, %s352_s21  }
   0x6   :  { %s353_s22 = smov [#allocation7]  }
   0x7   :  { %s30_s23 = sshll.u32 %s353_s22, 4  ;;  %s31_s23 = int_to_ptr.vmem [resolvable:$true] %s30_s23 }
   0x8   :  { %36 = dma.hbm_to_vmem [thread:$0]  %s29_s19, 64, %s31_s23, [#allocation8], %s351_s20, %s351_s20, %s352_s21  }
   0x9   :  { %344 = dma.done.wait [#allocation5], 64  }
   0xa   :  { %345 = vsyncadd [#allocation5], 4294967232 }
   0xb   :  { %346 = dma.done.wait [#allocation8], 64  }
   0xc   :  { %347 = vsyncadd [#allocation8], 4294967232  ;;  %v354_v0 = vmov 0.0   ;;  %vm67_vm0 = vcmask 1041408   ;;  %v55_v1 = vld [vmem:[#allocation4] sm:$0x3] }
   0xd   :  { %53 = vst [vmem:[#allocation3] sm:$0x1] %v354_v0  ;;  %v56_v2 = vld [vmem:[#allocation4 + $0x2] sm:$0x3]  ;;  %v57_v3 = vld [vmem:[#allocation7] sm:$0x3] }
   0xe   :  { %51 = vst [vmem:[#allocation2] sm:$0x1] %v354_v0  ;;  %v63_v4 = vand.u32 2147483647, %v55_v1  ;;  %v64_v5 = vand.u32 2147483647, %v56_v2  ;;  %v59_v6 = vsub.f32 %v55_v1, %v57_v3 }
   0xf   :  { %52 = vst [vmem:[#allocation2 + $0x1] sm:$0x1] %v354_v0  ;;  %v58_v7 = vld [vmem:[#allocation7 + $0x2] sm:$0x3]  ;;  %vm117_vm1 = vcmask 1040384   ;;  %v355_v61 = vmov 0  }
  0x10   :  { %54 = vst [vmem:[#allocation3 + $0x1] sm:$0x1] %v354_v0  ;;  %v88_v8 = vsel %vm67_vm0, %v63_v4, 0.0  ;;  %v95_v9 = vsel %vm67_vm0, %v64_v5, 0.0  ;;  %v61_v10 = vand.u32 2147483647, %v59_v6  ;;  %v60_v11 = vsub.f32 %v56_v2, %v58_v7  ;;  %253 = vset.pattern.permute.xlu2 %v355_v61  ;;  %259 = vset.pattern.permute.xlu0 %v355_v61 }
  0x11   :  { %v89_v12 = vrot.slane %v88_v8, 4  ;;  %v96_v13 = vrot.slane %v95_v9, 4  ;;  %s226_s29 = sshll.u32 %s407_s3, 4  ;;  %s357_s30 = smov 16   ;;  %s227_s29 = int_to_ptr.hbm [resolvable:$true] %s226_s29 }
  0x12   :  { %v68_v14 = vsel %vm67_vm0, %v61_v10, 0.0  ;;  %v62_v15 = vand.u32 2147483647, %v60_v11  ;;  %s358_s4 = smov 1  }
  0x13   :  { %v90_v16 = vadd.f32 %v89_v12, %v88_v8  ;;  %v97_v17 = vadd.f32 %v96_v13, %v95_v9  ;;  %v69_v18 = vrot.slane %v68_v14, 4  ;;  %v160_v8 = vld [vmem:[%s406_s2] sm:$0x1] }
  0x14   :  { %v75_v19 = vsel %vm67_vm0, %v62_v15, 0.0  ;;  %v86_v32 = vld [vmem:[#allocation3] sm:$0x1] }
  0x15   :  { %v91_v20 = vrot.slane %v90_v16, 2  ;;  %v98_v21 = vrot.slane %v97_v17, 2  ;;  %v70_v22 = vadd.f32 %v69_v18, %v68_v14  ;;  %v76_v23 = vrot.slane %v75_v19, 4  ;;  %v65_v38 = vld [vmem:[#allocation2] sm:$0x1] }
  0x16   :  { %v66_v43 = vld [vmem:[#allocation2 + $0x1] sm:$0x1] }
  0x17   :  { %v92_v24 = vadd.f32 %v91_v20, %v90_v16  ;;  %v99_v25 = vadd.f32 %v98_v21, %v97_v17  ;;  %v71_v26 = vrot.slane %v70_v22, 2  ;;  %v77_v27 = vadd.f32 %v76_v23, %v75_v19  ;;  %v87_v33 = vld [vmem:[#allocation3 + $0x1] sm:$0x1]  ;;  %v161_v21 = vld [vmem:[%s406_s2 + $0x1] sm:$0x1]  ;;  %s356_s2 = smov [#allocation9]  }
  0x18   :  { %s224_s26 = sshll.u32 %s356_s2, 4  ;;  %s225_s26 = int_to_ptr.vmem [resolvable:$true] %s224_s26 }
  0x19   :  { %v93_v28 = vrot.slane %v92_v24, 1  ;;  %v100_v29 = vrot.slane %v99_v25, 1  ;;  %v72_v30 = vadd.f32 %v71_v26, %v70_v22  ;;  %v78_v31 = vrot.slane %v77_v27, 2 }
  0x1b   :  { %v94_v34 = vadd.f32 %v93_v28, %v92_v24  ;;  %v101_v35 = vadd.f32 %v100_v29, %v99_v25  ;;  %v73_v36 = vrot.slane %v72_v30, 1  ;;  %v79_v37 = vadd.f32 %v78_v31, %v77_v27 }
  0x1d   :  { %v102_v39 = vadd.f32 %v94_v34, %v86_v32  ;;  %v103_v40 = vadd.f32 %v101_v35, %v87_v33  ;;  %v74_v41 = vadd.f32 %v73_v36, %v72_v30  ;;  %v80_v42 = vrot.slane %v79_v37, 1 }
  0x1f   :  { %104 = vst [vmem:[#allocation3] sm:$0x1] %v102_v39  ;;  %v82_v44 = vadd.f32 %v74_v41, %v65_v38  ;;  %v81_v45 = vadd.f32 %v80_v42, %v79_v37 }
  0x20   :  { %105 = vst [vmem:[#allocation3 + $0x1] sm:$0x1] %v103_v40 }
  0x21   :  { %84 = vst [vmem:[#allocation2] sm:$0x1] %v82_v44  ;;  %v83_v46 = vadd.f32 %v81_v45, %v66_v43 }
  0x23   :  { %85 = vst [vmem:[#allocation2 + $0x1] sm:$0x1] %v83_v46 }
  0x26   :  { %v113_v47 = vld [vmem:[#allocation3] sm:$0x1] }
  0x27   :  { %v124_v48 = vsel %vm117_vm1, %v113_v47, 0.0  ;;  %v114_v51 = vld [vmem:[#allocation3 + $0x1] sm:$0x1] }
  0x28   :  { %125 = vadd.xlane.f32.xlu0 %v124_v48  ;;  %v109_v49 = vld [vmem:[#allocation2] sm:$0x1]  ;;  %v127_v53 = vsel %vm117_vm1, %v114_v51, 0.0 }
  0x29   :  { %v118_v50 = vsel %vm117_vm1, %v109_v49, 0.0 }
  0x2a   :  { %119 = vadd.xlane.f32.xlu1 %v118_v50  ;;  %v110_v52 = vld [vmem:[#allocation2 + $0x1] sm:$0x1] }
  0x2b   :  { %v121_v54 = vsel %vm117_vm1, %v110_v52, 0.0 }
  0x30   :  { %128 = vadd.xlane.f32.xlu0 %v127_v53 }
  0x32   :  { %122 = vadd.xlane.f32.xlu1 %v121_v54 }
  0x9b   :  { %v126_v55 = vpop.xlane.xlu0 %125 }
  0x9c   :  { %260 = vrcp.f32 %v126_v55  ;;  %v141_v60 = vand.u32 2147483648, %v126_v55  ;;  %v139_v63 = vand.u32 2147483647, %v126_v55  ;;  %vm135_vm3 = vweird.f32 %v126_v55 }
  0x9d   :  { %v120_v1 = vpop.xlane.xlu1 %119 }
  0x9e   :  { %v142_v4 = vor.u32 1.1754944e-38, %v141_v60  ;;  %vm140_vm5 = vcmp.eq.f32.partialorder %v139_v63, 8.507059e+37 }
  0xa2   :  { %v261_v56 = vpop.eup %260 }
  0xa3   :  { %v131_v57 = vmul.f32 %v261_v56, %v126_v55  ;;  %v129_v58 = vpop.xlane.xlu0 %128  ;;  %vm136_vm2 = vweird.f32 %v261_v56 }
  0xa4   :  { %262 = vrcp.f32 %v129_v58  ;;  %vm137_vm4 = vmor %vm135_vm3, %vm136_vm2  ;;  %v156_v11 = vand.u32 2147483648, %v129_v58  ;;  %v154_v14 = vand.u32 2147483647, %v129_v58  ;;  %vm150_vm7 = vweird.f32 %v129_v58 }
  0xa5   :  { %v132_v59 = vsub.f32 1.0, %v131_v57  ;;  %v123_v18 = vpop.xlane.xlu1 %122 }
  0xa6   :  { %v157_v17 = vor.u32 1.1754944e-38, %v156_v11  ;;  %vm155_vm9 = vcmp.eq.f32.partialorder %v154_v14, 8.507059e+37 }
  0xa7   :  { %v133_v62 = vmul.f32 %v261_v56, %v132_v59 }
  0xa9   :  { %v134_v2 = vadd.f32 %v261_v56, %v133_v62 }
  0xaa   :  { %v263_v3 = vpop.eup %262 }
  0xab   :  { %v146_v5 = vmul.f32 %v263_v3, %v129_v58  ;;  %v138_v6 = vsel %vm137_vm4, %v261_v56, %v134_v2  ;;  %vm151_vm6 = vweird.f32 %v263_v3 }
  0xac   :  { %v143_v7 = vsel %vm140_vm5, %v142_v4, %v138_v6  ;;  %vm152_vm8 = vmor %vm150_vm7, %vm151_vm6 }
  0xad   :  { %v147_v9 = vsub.f32 1.0, %v146_v5  ;;  %v144_v10 = vmul.f32 %v143_v7, %v120_v1 }
  0xaf   :  { %v148_v12 = vmul.f32 %v263_v3, %v147_v9  ;;  %v162_v13 = vsub.f32 %v144_v10, %v160_v8 }
  0xb1   :  { %v240_v15 = vmul.f32 -1.442695, %v162_v13  ;;  %v149_v16 = vadd.f32 %v263_v3, %v148_v12 }
  0xb3   :  { %264 = vpow2.f32 %v240_v15  ;;  %v153_v19 = vsel %vm152_vm8, %v263_v3, %v149_v16 }
  0xb4   :  { %v158_v20 = vsel %vm155_vm9, %v157_v17, %v153_v19 }
  0xb5   :  { %v159_v22 = vmul.f32 %v158_v20, %v123_v18 }
  0xb7   :  { %v163_v23 = vsub.f32 %v159_v22, %v161_v21 }
  0xb9   :  { %v265_v24 = vpop.eup %264  ;;  %v241_v25 = vmul.f32 -1.442695, %v163_v23 }
  0xba   :  { %v170_v26 = vadd.f32 1.0, %v265_v24 }
  0xbb   :  { %266 = vpow2.f32 %v241_v25 }
  0xbc   :  { %268 = vrcp.f32 %v170_v26  ;;  %v183_v35 = vand.u32 2147483648, %v170_v26  ;;  %vm177_vm11 = vweird.f32 %v170_v26  ;;  %v181_v36 = vand.u32 2147483647, %v170_v26 }
  0xbe   :  { %v184_v40 = vor.u32 1.1754944e-38, %v183_v35  ;;  %vm182_vm13 = vcmp.eq.f32.partialorder %v181_v36, 8.507059e+37 }
  0xc1   :  { %v267_v27 = vpop.eup %266 }
  0xc2   :  { %v269_v28 = vpop.eup %268  ;;  %v171_v29 = vadd.f32 1.0, %v267_v27 }
  0xc3   :  { %v173_v30 = vmul.f32 %v269_v28, %v170_v26  ;;  %vm178_vm10 = vweird.f32 %v269_v28 }
  0xc4   :  { %270 = vrcp.f32 %v171_v29  ;;  %vm179_vm12 = vmor %vm177_vm11, %vm178_vm10  ;;  %v198_v41 = vand.u32 2147483648, %v171_v29  ;;  %v196_v43 = vand.u32 2147483647, %v171_v29  ;;  %vm192_vm15 = vweird.f32 %v171_v29 }
  0xc5   :  { %v174_v31 = vsub.f32 1.0, %v173_v30 }
  0xc6   :  { %v199_v46 = vor.u32 1.1754944e-38, %v198_v41  ;;  %vm197_vm1 = vcmp.eq.f32.partialorder %v196_v43, 8.507059e+37 }
  0xc7   :  { %v175_v32 = vmul.f32 %v269_v28, %v174_v31 }
  0xc9   :  { %v176_v33 = vadd.f32 %v269_v28, %v175_v32 }
  0xca   :  { %v271_v34 = vpop.eup %270 }
  0xcb   :  { %v188_v37 = vmul.f32 %v271_v34, %v171_v29  ;;  %v180_v38 = vsel %vm179_vm12, %v269_v28, %v176_v33  ;;  %vm193_vm14 = vweird.f32 %v271_v34 }
  0xcc   :  { %v185_v44 = vsel %vm182_vm13, %v184_v40, %v180_v38  ;;  %vm194_vm0 = vmor %vm192_vm15, %vm193_vm14 }
  0xcd   :  { %v189_v39 = vsub.f32 1.0, %v188_v37  ;;  %vm202_vm2 = vcmp.gt.f32.partialorder %v185_v44, 0.5 }
  0xce   :  { %v242_v49 = vsel %vm202_vm2, 1.0, %v354_v0 }
  0xcf   :  { %v190_v42 = vmul.f32 %v271_v34, %v189_v39 }
  0xd1   :  { %v191_v45 = vadd.f32 %v271_v34, %v190_v42 }
  0xd3   :  { %v195_v47 = vsel %vm194_vm0, %v271_v34, %v191_v45 }
  0xd4   :  { %v200_v48 = vsel %vm197_vm1, %v199_v46, %v195_v47 }
  0xd5   :  { %vm203_vm3 = vcmp.gt.f32.partialorder %v200_v48, 0.5 }
  0xd6   :  { %v243_v50 = vsel %vm203_vm3, 1.0, %v354_v0 }
  0xd7   :  { %v254_v51 = vpack.i.bf16 %v243_v50, %v242_v49 }
  0xd9   :  { %255 = vperm.xlu2 %253, %v254_v51  }
 0x133   :  { %v256_v52 = vpop.permute.xlu2 %255 }
 0x134   :  { %v258_v53 = vunpack.i.h.bf16 %v256_v52  ;;  %v257_v54 = vunpack.i.l.bf16 %v256_v52 }
 0x136   :  { %219 = vst [vmem:[#allocation9 + $0x1] sm:$0x1] %v258_v53 }
 0x137   :  { %218 = vst [vmem:[#allocation9] sm:$0x1] %v257_v54 }
 0x138   :  { %232 = dma.vmem_to_hbm [thread:$0]  %s225_s26, 32, %s227_s29, [#allocation6], %s357_s30, %s357_s30, %s358_s4  }
 0x139   :  { %348 = dma.done.wait [#allocation6], 32  }
 0x13a   :  { %349 = vsyncadd [#allocation6], 4294967264 }
 0x13b   :  { %237 = vsyncpa [#allocation5], 1 }
 0x13c   :  { %238 = vsyncpa [#allocation8], 1 }
 0x13d   :  { %239 = vsyncpa [#allocation6], 1 }

</bundles_post_ra>
